<compile_context>
chip_gen: v5e
topology: v5e:2x2
jax: 0.10.0
libtpu: 0.0.40
codegen_flags: <defaults>
</compile_context>

<pallas_src>
import jax
import jax.numpy as jnp
from jax.experimental import pallas as pl
from jax.experimental.pallas import tpu as pltpu


_VMEM_LIMIT = 32 * 1024 * 1024   # safe on v5e/v6e (128 MiB) and v7x (64 MiB)


# ---------------------------------------------------------------------------
# Kernels
# ---------------------------------------------------------------------------

def gcn_layer_kernel(adj_ref, xw_ref, dinv_ref, b_ref, out_ref, acc_ref):
    """out = relu(dinv_row * ((A+I) @ XW_scaled) + b), tiled over (rows, K).

    adj_ref : [tm, tk] int8 slab of (A + I), exact 0/1 values
    xw_ref  : [tk, hid_pad] pre-scaled feature transform (dinv_k * (X @ W))
    dinv_ref: [tm, 1] f32 row normalization d_i^-1/2
    b_ref   : [1, hid_pad] f32 bias
    """
    k = pl.program_id(1)

    @pl.when(k == 0)
    def _init():
        acc_ref[...] = jnp.zeros_like(acc_ref)

    # Upcast the 0/1 int8 tile on the VPU (exact), feed the MXU, accumulate f32.
    adj = adj_ref[...].astype(jnp.float32).astype(xw_ref.dtype)
    acc_ref[...] += jnp.dot(adj, xw_ref[...],
                            preferred_element_type=jnp.float32)

    @pl.when(k == pl.num_programs(1) - 1)
    def _finalize():
        h = acc_ref[...] * dinv_ref[...] + b_ref[...]
        out_ref[...] = jnp.maximum(h, 0.0).astype(out_ref.dtype)


def pool_linear_kernel(pool_ref, h_ref, w3_ref, b3_ref, out_ref, acc_ref):
    """out = (P @ H) @ W3 + b3, reducing over the node axis; all-f32 epilogue."""
    k = pl.program_id(0)

    @pl.when(k == 0)
    def _init():
        acc_ref[...] = jnp.zeros_like(acc_ref)

    acc_ref[...] += jnp.dot(pool_ref[...], h_ref[...],
                            preferred_element_type=jnp.float32)

    @pl.when(k == pl.num_programs(0) - 1)
    def _finalize():
        # Keep the pooled accumulator in f32 for the tiny final Linear.
        out_ref[...] = (jnp.dot(acc_ref[...], w3_ref[...],
                                preferred_element_type=jnp.float32)
                        + b3_ref[...])


# ---------------------------------------------------------------------------
# pallas_call wrappers
# ---------------------------------------------------------------------------

def gcn_layer(adj_i8, xw_scaled, dinv_col, bias, *, tm, tk, out_dtype):
    n = adj_i8.shape[0]
    hid_pad = xw_scaled.shape[1]
    grid = (n // tm, n // tk)

    xw_itemsize = jnp.dtype(xw_scaled.dtype).itemsize
    out_itemsize = jnp.dtype(out_dtype).itemsize
    n_row_blocks = n // tm
    bytes_accessed = int(
        n * n * 1                                   # int8 (A+I), streamed once
        + n * hid_pad * xw_itemsize * n_row_blocks  # XW slabs re-read per row block
        + n * 4 + hid_pad * 4                       # dinv column + bias
        + n * hid_pad * out_itemsize)               # H written
    flops = int(2 * n * n * hid_pad)

    return pl.pallas_call(
        gcn_layer_kernel,
        out_shape=jax.ShapeDtypeStruct((n, hid_pad), out_dtype),
        grid_spec=pltpu.PrefetchScalarGridSpec(
            num_scalar_prefetch=0,
            grid=grid,
            in_specs=[
                pl.BlockSpec((tm, tk), lambda i, k: (i, k)),       # (A+I) int8 slab
                pl.BlockSpec((tk, hid_pad), lambda i, k: (k, 0)),  # scaled XW slab
                pl.BlockSpec((tm, 1), lambda i, k: (i, 0)),        # row dinv (f32)
                pl.BlockSpec((1, hid_pad), lambda i, k: (0, 0)),   # bias (f32)
            ],
            out_specs=pl.BlockSpec((tm, hid_pad), lambda i, k: (i, 0)),
            scratch_shapes=[pltpu.VMEM((tm, hid_pad), jnp.float32)],
        ),
        compiler_params=pltpu.CompilerParams(
            dimension_semantics=("parallel", "arbitrary"),
            vmem_limit_bytes=_VMEM_LIMIT),
        cost_estimate=pl.CostEstimate(
            flops=flops, transcendentals=0, bytes_accessed=bytes_accessed),
    )(adj_i8, xw_scaled, dinv_col, bias)


def pool_linear(pool, h, w3, b3, *, tk):
    b_graphs, n = pool.shape
    hid_pad = h.shape[1]
    out_pad = w3.shape[1]
    grid = (n // tk,)

    bytes_accessed = int(pool.size * pool.dtype.itemsize
                         + h.size * h.dtype.itemsize
                         + w3.size * 4 + b3.size * 4
                         + b_graphs * out_pad * 4)
    flops = int(2 * b_graphs * n * hid_pad + 2 * b_graphs * hid_pad * out_pad)

    return pl.pallas_call(
        pool_linear_kernel,
        out_shape=jax.ShapeDtypeStruct((b_graphs, out_pad), jnp.float32),
        grid_spec=pltpu.PrefetchScalarGridSpec(
            num_scalar_prefetch=0,
            grid=grid,
            in_specs=[
                pl.BlockSpec((b_graphs, tk), lambda k: (0, k)),    # P K-slab
                pl.BlockSpec((tk, hid_pad), lambda k: (k, 0)),     # H K-slab
                pl.BlockSpec((hid_pad, out_pad), lambda k: (0, 0)),  # W3 (f32, resident)
                pl.BlockSpec((1, out_pad), lambda k: (0, 0)),        # b3 (f32)
            ],
            out_specs=pl.BlockSpec((b_graphs, out_pad), lambda k: (0, 0)),
            scratch_shapes=[pltpu.VMEM((b_graphs, hid_pad), jnp.float32)],
        ),
        compiler_params=pltpu.CompilerParams(
            dimension_semantics=("arbitrary",),
            vmem_limit_bytes=_VMEM_LIMIT),
        cost_estimate=pl.CostEstimate(
            flops=flops, transcendentals=0, bytes_accessed=bytes_accessed),
    )(pool, h, w3, b3)


# ---------------------------------------------------------------------------
# Graph preprocessing (done in XLA outside the kernels)
# ---------------------------------------------------------------------------

def build_graph_operators(edge_index, num_nodes):
    """Dense A+I with A[dst, src] = 1 (source->target flow) and D^-1/2."""
    src, dst = edge_index[0], edge_index[1]
    a = jnp.zeros((num_nodes, num_nodes), jnp.float32).at[dst, src].add(1.0)
    a = a + jnp.eye(num_nodes, dtype=jnp.float32)        # add self loops
    deg = a.sum(axis=1)
    dinv = jnp.where(deg > 0, jax.lax.rsqrt(deg), 0.0)
    return a, dinv


def build_mean_pool_matrix(batch, num_graphs):
    onehot = (batch[None, :] == jnp.arange(num_graphs)[:, None]).astype(jnp.float32)
    counts = onehot.sum(axis=1, keepdims=True)
    return onehot / jnp.maximum(counts, 1.0)


def _round_up(x, m):
    return (x + m - 1) // m * m


def _choose_tiles(n):
    """Pick (n_pad, tm, tk) — 256-row x up-to-1024-col adjacency slabs."""
    if n <= 128:
        return 128, 128, 128
    n_pad = _round_up(n, 256)
    tm = 256
    tk = 256
    for cand in (1024, 512, 256):
        if n_pad % cand == 0:
            tk = cand
            break
    return n_pad, tm, tk


def _choose_pool_tk(n_pad):
    for cand in (4096, 2048, 1024, 512, 256, 128):
        if n_pad % cand == 0:
            return cand
    return n_pad


# ---------------------------------------------------------------------------
# Forward pass
# ---------------------------------------------------------------------------

def gnn_forward(x, edge_index, batch, params, num_graphs,
                *, compute_dtype=jnp.bfloat16):
    n = x.shape[0]
    w1, b1, w2, b2, w3, b3 = params
    hid = w1.shape[1]
    out_classes = w3.shape[1]

    a_plus_i, dinv = build_graph_operators(edge_index, n)
    pool = build_mean_pool_matrix(batch, num_graphs)

    # --- padding / tile selection --------------------------------------------
    n_pad, tm, tk = _choose_tiles(n)
    pad = n_pad - n
    hid_pad = _round_up(hid, 128)
    out_pad = _round_up(out_classes, 128)

    # Exact 0/1 (A+I) streamed as int8 (halves the dominant N^2 HBM stream);
    # the D^-1/2 normalization is applied to XW columns / output rows instead.
    adj_i8 = jnp.pad(a_plus_i, ((0, pad), (0, pad))).astype(jnp.int8)
    dinv_col = jnp.pad(dinv, (0, pad)).reshape(-1, 1)           # [n_pad, 1] f32
    pool_p = jnp.pad(pool, ((0, 0), (0, pad))).astype(compute_dtype)

    # Lane-dense (128-wide) parameters; padded channels are exactly zero.
    w1_p = jnp.pad(w1, ((0, 0), (0, hid_pad - hid)))
    b1_p = jnp.pad(b1, (0, hid_pad - hid)).reshape(1, -1).astype(jnp.float32)
    w2_p = jnp.pad(w2, ((0, hid_pad - hid), (0, hid_pad - hid)))
    b2_p = jnp.pad(b2, (0, hid_pad - hid)).reshape(1, -1).astype(jnp.float32)
    w3_p = jnp.pad(w3, ((0, hid_pad - hid), (0, out_pad - out_classes))).astype(jnp.float32)
    b3_p = jnp.pad(b3, (0, out_pad - out_classes)).reshape(1, -1).astype(jnp.float32)

    x_p = jnp.pad(x.astype(jnp.float32), ((0, pad), (0, 0)))

    # Padded nodes are harmless: their (A+I) rows/cols, dinv and pool columns
    # are all zero, so they never reach real rows nor the pooled output.

    # --- layer 1: hoisted feature transform + streamed aggregation -----------
    xw1 = ((x_p @ w1_p) * dinv_col).astype(compute_dtype)        # [n_pad, hid_pad]
    h1 = gcn_layer(adj_i8, xw1, dinv_col, b1_p, tm=tm, tk=tk,
                   out_dtype=compute_dtype)

    # --- layer 2 --------------------------------------------------------------
    xw2 = ((h1.astype(jnp.float32) @ w2_p) * dinv_col).astype(compute_dtype)
    h2 = gcn_layer(adj_i8, xw2, dinv_col, b2_p, tm=tm, tk=tk,
                   out_dtype=compute_dtype)

    # --- mean pool + classifier ----------------------------------------------
    logits = pool_linear(pool_p, h2, w3_p, b3_p, tk=_choose_pool_tk(n_pad))
    return logits[:, :out_classes].astype(jnp.float32)


def reference_forward(x, edge_index, batch, params, num_graphs):
    a_plus_i, dinv = build_graph_operators(edge_index, x.shape[0])
    ahat = dinv[:, None] * a_plus_i * dinv[None, :]
    pool = build_mean_pool_matrix(batch, num_graphs)
    w1, b1, w2, b2, w3, b3 = params
    h1 = jnp.maximum(ahat @ (x @ w1) + b1, 0.0)
    h2 = jnp.maximum(ahat @ (h1 @ w2) + b2, 0.0)
    return (pool @ h2) @ w3 + b3


# ---------------------------------------------------------------------------
# Demo / correctness check
# ---------------------------------------------------------------------------

if __name__ == "__main__":
    num_node_features = 4
    hidden_channels = 32
    num_nodes = 16
    num_graphs = 2
    out_classes = 2

    key = jax.random.PRNGKey(0)
    kx, k1, k2, k3, k4 = jax.random.split(key, 5)

    # Node features
    x = jax.random.normal(kx, (num_nodes, num_node_features), jnp.float32)

    # Two graphs of 8 nodes each, each a bidirectional ring.
    batch = jnp.concatenate([jnp.zeros(8, jnp.int32), jnp.ones(8, jnp.int32)])
    edges = []
    for g in range(num_graphs):
        base = g * 8
        for i in range(8):
            j = (i + 1) % 8
            edges.append((base + i, base + j))
            edges.append((base + j, base + i))
    edge_index = jnp.array(edges, jnp.int32).T          # [2, E] = [2, 32]

    # Deterministic parameters.
    w1 = jax.random.normal(k1, (num_node_features, hidden_channels), jnp.float32) * 0.1
    b1 = jnp.zeros((hidden_channels,), jnp.float32)
    w2 = jax.random.normal(k2, (hidden_channels, hidden_channels), jnp.float32) * 0.1
    b2 = jnp.zeros((hidden_channels,), jnp.float32)
    w3 = jax.random.normal(k3, (hidden_channels, out_classes), jnp.float32) * 0.1
    b3 = jax.random.normal(k4, (out_classes,), jnp.float32) * 0.1
    params = (w1, b1, w2, b2, w3, b3)

    ref = reference_forward(x, edge_index, batch, params, num_graphs)

    # f32 compute path: tight tolerance against the XLA reference.
    out_f32 = jax.block_until_ready(
        gnn_forward(x, edge_index, batch, params, num_graphs,
                    compute_dtype=jnp.float32))
    assert out_f32.shape == (num_graphs, out_classes)
    assert jnp.allclose(out_f32, ref, atol=1e-4, rtol=1e-4), (out_f32, ref)

    # bf16 storage/MXU path (default): loose tolerance vs f32 reference.
    out_bf16 = jax.block_until_ready(
        gnn_forward(x, edge_index, batch, params, num_graphs,
                    compute_dtype=jnp.bfloat16))
    assert out_bf16.shape == (num_graphs, out_classes)
    assert jnp.allclose(out_bf16, ref, atol=5e-2, rtol=5e-2), (out_bf16, ref)

    # TODO(synk): for production, batch many graphs per call (block-diagonal
    # A+I) so per-call fixed overhead amortizes; the tiling already supports
    # arbitrarily large N.

    print("KERNEL_OK")
</pallas_src>

<mosaic_0001>
module attributes {stable_mosaic.version = 11 : i64} {
  func.func @gcn_layer_kernel(%arg0: i32, %arg1: i32, %arg2: memref<128x128xi8, #tpu.memory_space<vmem>>, %arg3: memref<128x128xf32, #tpu.memory_space<vmem>>, %arg4: memref<128x1xf32, #tpu.memory_space<vmem>>, %arg5: memref<1x128xf32, #tpu.memory_space<vmem>>, %arg6: memref<128x128xf32, #tpu.memory_space<vmem>>, %arg7: memref<128x128xf32, #tpu.memory_space<vmem>>) attributes {dimension_semantics = [#tpu.dimension_semantics<parallel>, #tpu.dimension_semantics<arbitrary>], iteration_bounds = array<i64: 1, 1>, scalar_prefetch = 0 : i64, scratch_operands = 1 : i64, tpu.core_type = #tpu.core_type<tc>, window_params = [{transform_indices = @transform_0, window_bounds = array<i64: 128, 128>}, {transform_indices = @transform_1, window_bounds = array<i64: 128, 128>}, {transform_indices = @transform_2, window_bounds = array<i64: 128, 1>}, {pipeline_mode = #tpu.pipeline_mode<synchronous>, transform_indices = @transform_3, window_bounds = array<i64: 1, 128>}, {transform_indices = @transform_4, window_bounds = array<i64: 128, 128>}]} {
    %c0_i32 = arith.constant 0 : i32
    %0 = arith.cmpi eq, %arg1, %c0_i32 : i32
    %1 = arith.extui %0 : i1 to i32
    %c0_i32_0 = arith.constant 0 : i32
    %2 = arith.cmpi ne, %1, %c0_i32_0 : i32
    scf.if %2 {
      %cst_10 = arith.constant 0.000000e+00 : f32
      %13 = vector.broadcast %cst_10 : f32 to vector<128x128xf32>
      %c0_11 = arith.constant 0 : index
      %c0_12 = arith.constant 0 : index
      %14 = vector.load %arg7[%c0_11, %c0_12] : memref<128x128xf32, #tpu.memory_space<vmem>>, vector<128x128xf32>
      tpu.vector_store %arg7[%c0_11, %c0_12], %13 {strides = array<i32>} : memref<128x128xf32, #tpu.memory_space<vmem>>, vector<128x128xf32>,
    } else {
    }
    %c0 = arith.constant 0 : index
    %c0_1 = arith.constant 0 : index
    %3 = vector.load %arg2[%c0, %c0_1] : memref<128x128xi8, #tpu.memory_space<vmem>>, vector<128x128xi8>
    %4 = arith.sitofp %3 : vector<128x128xi8> to vector<128x128xf32>
    %c0_2 = arith.constant 0 : index
    %c0_3 = arith.constant 0 : index
    %5 = vector.load %arg7[%c0_2, %c0_3] : memref<128x128xf32, #tpu.memory_space<vmem>>, vector<128x128xf32>
    %c0_4 = arith.constant 0 : index
    %c0_5 = arith.constant 0 : index
    %6 = vector.load %arg3[%c0_4, %c0_5] : memref<128x128xf32, #tpu.memory_space<vmem>>, vector<128x128xf32>
    %cst = arith.constant dense<0.000000e+00> : vector<128x128xf32>
    %7 = tpu.matmul %4, %6, %cst {dimension_numbers = #tpu.dot_dimension_numbers<[1], [0], [0], [1], [0, 0, 1, 1], [], []>} : vector<128x128xf32>, vector<128x128xf32>, vector<128x128xf32> -> vector<128x128xf32>
    %8 = arith.addf %5, %7 : vector<128x128xf32>
    %c0_6 = arith.constant 0 : index
    %c0_7 = arith.constant 0 : index
    %9 = vector.load %arg7[%c0_6, %c0_7] : memref<128x128xf32, #tpu.memory_space<vmem>>, vector<128x128xf32>
    tpu.vector_store %arg7[%c0_6, %c0_7], %8 {strides = array<i32>} : memref<128x128xf32, #tpu.memory_space<vmem>>, vector<128x128xf32>,
    %c0_i32_8 = arith.constant 0 : i32
    %10 = arith.cmpi eq, %arg1, %c0_i32_8 : i32
    %11 = arith.extui %10 : i1 to i32
    %c0_i32_9 = arith.constant 0 : i32
    %12 = arith.cmpi ne, %11, %c0_i32_9 : i32
    scf.if %12 {
      %c0_10 = arith.constant 0 : index
      %c0_11 = arith.constant 0 : index
      %13 = vector.load %arg7[%c0_10, %c0_11] : memref<128x128xf32, #tpu.memory_space<vmem>>, vector<128x128xf32>
      %c0_12 = arith.constant 0 : index
      %c0_13 = arith.constant 0 : index
      %14 = vector.load %arg4[%c0_12, %c0_13] : memref<128x1xf32, #tpu.memory_space<vmem>>, vector<128x1xf32>
      %15 = vector.broadcast %14 : vector<128x1xf32> to vector<128x128xf32>
      %16 = arith.mulf %13, %15 : vector<128x128xf32>
      %c0_14 = arith.constant 0 : index
      %c0_15 = arith.constant 0 : index
      %17 = vector.load %arg5[%c0_14, %c0_15] : memref<1x128xf32, #tpu.memory_space<vmem>>, vector<1x128xf32>
      %18 = vector.broadcast %17 : vector<1x128xf32> to vector<128x128xf32>
      %19 = arith.addf %16, %18 : vector<128x128xf32>
      %cst_16 = arith.constant 0.000000e+00 : f32
      %20 = vector.broadcast %cst_16 : f32 to vector<128x128xf32>
      %21 = arith.maximumf %19, %20 : vector<128x128xf32>
      %c0_17 = arith.constant 0 : index
      %c0_18 = arith.constant 0 : index
      %22 = vector.load %arg6[%c0_17, %c0_18] : memref<128x128xf32, #tpu.memory_space<vmem>>, vector<128x128xf32>
      tpu.vector_store %arg6[%c0_17, %c0_18], %21 {strides = array<i32>} : memref<128x128xf32, #tpu.memory_space<vmem>>, vector<128x128xf32>,
    } else {
    }
    return
  }
  func.func @transform_0(%arg0: i32, %arg1: i32) -> (i32, i32) {
    %c0_i32 = arith.constant 0 : i32
    return %arg0, %arg1 : i32, i32
  }
  func.func @transform_1(%arg0: i32, %arg1: i32) -> (i32, i32) {
    %c0_i32 = arith.constant 0 : i32
    %c0_i32_0 = arith.constant 0 : i32
    return %arg1, %c0_i32 : i32, i32
  }
  func.func @transform_2(%arg0: i32, %arg1: i32) -> (i32, i32) {
    %c0_i32 = arith.constant 0 : i32
    %c0_i32_0 = arith.constant 0 : i32
    return %arg0, %c0_i32 : i32, i32
  }
  func.func @transform_3(%arg0: i32, %arg1: i32) -> (i32, i32) {
    %c0_i32 = arith.constant 0 : i32
    %c0_i32_0 = arith.constant 0 : i32
    %c0_i32_1 = arith.constant 0 : i32
    return %c0_i32, %c0_i32_0 : i32, i32
  }
  func.func @transform_4(%arg0: i32, %arg1: i32) -> (i32, i32) {
    %c0_i32 = arith.constant 0 : i32
    %c0_i32_0 = arith.constant 0 : i32
    return %arg0, %c0_i32 : i32, i32
  }
}

</mosaic_0001>

<bundles_post_ra>
// kernel: tpu_custom_call.1
= control target key start
LH: loop header
LB: loop body
LE: loop exit
PB: predicated region body
PF: predicated region fallthrough
CT: control target
= control target key end

     0   :  { %9 = vsyncpa [#allocation4], 0  ;;  %s719_s0 = inlined_call_operand.hbm [shape: s8[128,128], index: 0, kind: input, shape index: {}]   ;;  %s720_s1 = inlined_call_operand.vmem [shape: f32[128,128], index: 1, kind: input, shape index: {}]   ;;  %s721_s2 = inlined_call_operand.vmem [shape: f32[128,1], index: 2, kind: input, shape index: {}]   ;;  %s722_s3 = inlined_call_operand.vmem [shape: f32[1,128], index: 3, kind: input, shape index: {}]   ;;  %s723_s4 = inlined_call_operand.hbm [shape: f32[128,128], index: 4, kind: output, shape index: {}]  }
   0x1   :  { %10 = vsyncpa [#allocation5], 0  ;;  %s15_s17 = sshll.u32 %s719_s0, 4  ;;  %s530_s18 = smov [#allocation3]   ;;  %s16_s17 = int_to_ptr.hbm [resolvable:$true] %s15_s17 }
   0x2   :  { %s17_s19 = sshll.u32 %s530_s18, 4  ;;  %s531_s20 = smov 128   ;;  %s18_s19 = int_to_ptr.vmem [resolvable:$true] %s17_s19 }
   0x3   :  { %s532_s21 = smov 8  }
   0x4   :  { %23 = dma.hbm_to_vmem [thread:$0]  %s16_s17, 512, %s18_s19, [#allocation4], %s531_s20, %s531_s20, %s532_s21  }
   0x5   :  { %526 = dma.done.wait [#allocation4], 512  }
   0x6   :  { %527 = vsyncadd [#allocation4], 4294966784  ;;  %v533_v0 = vmov 0   ;;  %v238_v1 = vld [vmem:[%s721_s2] sm:$0xff]  ;;  %v121_v2 = vld [vmem:[%s720_s1 + $0x78] sm:$0xff]  ;;  %s408_s12 = sshll.u32 %s723_s4, 4  ;;  %s409_s12 = int_to_ptr.hbm [resolvable:$true] %s408_s12 }
   0x7   :  { %474 = vset.pattern.permute.xlu0 %v533_v0  ;;  %475 = vset.pattern.permute.xlu1 %v533_v0  ;;  %v120_v3 = vld [vmem:[%s720_s1 + $0x70] sm:$0xff]  ;;  %v119_v4 = vld [vmem:[%s720_s1 + $0x68] sm:$0xff]  ;;  %v118_v5 = vld [vmem:[%s720_s1 + $0x60] sm:$0xff] }
   0x8   :  { %476 = vset.pattern.permute.xlu2 %v533_v0  ;;  %256 = vperm.xlu0 %474, %v238_v1   ;;  %v240_v6 = vld [vmem:[%s721_s2 + $0x10] sm:$0xff]  ;;  %v239_v7 = vld [vmem:[%s721_s2 + $0x8] sm:$0xff]  ;;  %v117_v8 = vld [vmem:[%s720_s1 + $0x58] sm:$0xff] }
   0x9   :  { %122 = vmatpush.msra.mxu0 %v121_v2  ;;  %421 = vmatpush.msra.mxu1 %v121_v2  ;;  %v116_v9 = vld [vmem:[%s720_s1 + $0x50] sm:$0xff]  ;;  %v115_v10 = vld [vmem:[%s720_s1 + $0x48] sm:$0xff]  ;;  %v114_v11 = vld [vmem:[%s720_s1 + $0x40] sm:$0xff] }
   0xa   :  { %422 = vmatpush.msra.mxu2 %v121_v2  ;;  %423 = vmatpush.msra.mxu3 %v121_v2  ;;  %v241_v12 = vld [vmem:[%s721_s2 + $0x18] sm:$0xff]  ;;  %v244_v13 = vld [vmem:[%s721_s2 + $0x30] sm:$0xff]  ;;  %v111_v16 = vld [vmem:[%s720_s1 + $0x28] sm:$0xff] }
   0xb   :  { %123 = vmatpush.msra.mxu0 %v120_v3  ;;  %424 = vmatpush.msra.mxu1 %v120_v3  ;;  %v113_v14 = vld [vmem:[%s720_s1 + $0x38] sm:$0xff]  ;;  %v112_v15 = vld [vmem:[%s720_s1 + $0x30] sm:$0xff]  ;;  %v110_v17 = vld [vmem:[%s720_s1 + $0x20] sm:$0xff] }
   0xc   :  { %425 = vmatpush.msra.mxu2 %v120_v3  ;;  %426 = vmatpush.msra.mxu3 %v120_v3  ;;  %v245_v18 = vld [vmem:[%s721_s2 + $0x38] sm:$0xff]  ;;  %v247_v19 = vld [vmem:[%s721_s2 + $0x48] sm:$0xff]  ;;  %v626_v21 = vld [vmem:[#allocation3] sm:$0xff] }
   0xd   :  { %124 = vmatpush.msra.mxu0 %v119_v4  ;;  %427 = vmatpush.msra.mxu1 %v119_v4  ;;  %v109_v20 = vld [vmem:[%s720_s1 + $0x18] sm:$0xff]  ;;  %v628_v22 = vld [vmem:[#allocation3 + $0x8] sm:$0xff]  ;;  %v630_v23 = vld [vmem:[#allocation3 + $0x10] sm:$0xff]  ;;  %v58_v26 = vunpack.c.0.s8 %v626_v21  ;;  %v59_v39 = vunpack.c.1.s8 %v626_v21  ;;  %v60_v50 = vunpack.c.2.s8 %v626_v21  ;;  %v61_v59 = vunpack.c.3.s8 %v626_v21 }
   0xe   :  { %428 = vmatpush.msra.mxu2 %v119_v4  ;;  %429 = vmatpush.msra.mxu3 %v119_v4  ;;  %v108_v24 = vld [vmem:[%s720_s1 + $0x10] sm:$0xff]  ;;  %v635_v25 = vld [vmem:[#allocation3 + $0x18] sm:$0xff]  ;;  %v107_v27 = vld [vmem:[%s720_s1 + $0x8] sm:$0xff]  ;;  %v62_v28 = vunpack.c.0.s8 %v628_v22  ;;  %v66_v29 = vunpack.c.0.s8 %v630_v23  ;;  %v63_v40 = vunpack.c.1.s8 %v628_v22  ;;  %v67_v41 = vunpack.c.1.s8 %v630_v23 }
   0xf   :  { %125 = vmatpush.msra.mxu0 %v118_v5  ;;  %430 = vmatpush.msra.mxu1 %v118_v5  ;;  %v70_v30 = vunpack.c.0.s8 %v635_v25  ;;  %v106_v31 = vld [vmem:[%s720_s1] sm:$0xff]  ;;  %v74_v32 = vcvt.s32.f32 %v58_v26  ;;  %v248_v37 = vld [vmem:[%s721_s2 + $0x50] sm:$0xff]  ;;  %v71_v42 = vunpack.c.1.s8 %v635_v25  ;;  %v75_v43 = vcvt.s32.f32 %v59_v39  ;;  %v243_v47 = vld [vmem:[%s721_s2 + $0x28] sm:$0xff] }
  0x10   :  { %431 = vmatpush.msra.mxu2 %v118_v5  ;;  %432 = vmatpush.msra.mxu3 %v118_v5  ;;  %v78_v33 = vcvt.s32.f32 %v62_v28  ;;  %v82_v34 = vcvt.s32.f32 %v66_v29  ;;  %v242_v36 = vld [vmem:[%s721_s2 + $0x20] sm:$0xff]  ;;  %v79_v44 = vcvt.s32.f32 %v63_v40  ;;  %v83_v45 = vcvt.s32.f32 %v67_v41  ;;  %v251_v48 = vld [vmem:[%s721_s2 + $0x68] sm:$0xff]  ;;  %v253_v49 = vld [vmem:[%s721_s2 + $0x78] sm:$0xff] }
  0x11   :  { %266 = vperm.xlu1 %475, %v240_v6   ;;  %261 = vperm.xlu0 %474, %v239_v7   ;;  %v86_v35 = vcvt.s32.f32 %v70_v30  ;;  %v250_v38 = vld [vmem:[%s721_s2 + $0x60] sm:$0xff]  ;;  %v87_v46 = vcvt.s32.f32 %v71_v42  ;;  %v64_v51 = vunpack.c.2.s8 %v628_v22  ;;  %v68_v52 = vunpack.c.2.s8 %v630_v23  ;;  %v249_v3 = vld [vmem:[%s721_s2 + $0x58] sm:$0xff]  ;;  %v252_v4 = vld [vmem:[%s721_s2 + $0x70] sm:$0xff] }
  0x12   :  { %126 = vmatpush.msra.mxu0 %v117_v8  ;;  %433 = vmatpush.msra.mxu1 %v117_v8  ;;  %v72_v53 = vunpack.c.2.s8 %v635_v25  ;;  %v76_v54 = vcvt.s32.f32 %v60_v50  ;;  %v246_v58 = vld [vmem:[%s721_s2 + $0x40] sm:$0xff]  ;;  %v65_v60 = vunpack.c.3.s8 %v628_v22  ;;  %v69_v61 = vunpack.c.3.s8 %v630_v23  ;;  %s534_s2 = smov [#allocation6]  }
  0x13   :  { %434 = vmatpush.msra.mxu2 %v117_v8  ;;  %435 = vmatpush.msra.mxu3 %v117_v8  ;;  %v80_v55 = vcvt.s32.f32 %v64_v51  ;;  %v84_v56 = vcvt.s32.f32 %v68_v52  ;;  %v73_v62 = vunpack.c.3.s8 %v635_v25  ;;  %v77_v63 = vcvt.s32.f32 %v61_v59 }
  0x14   :  { %127 = vmatpush.msra.mxu0 %v116_v9  ;;  %436 = vmatpush.msra.mxu1 %v116_v9  ;;  %v88_v57 = vcvt.s32.f32 %v72_v53  ;;  %v81_v0 = vcvt.s32.f32 %v65_v60  ;;  %v85_v1 = vcvt.s32.f32 %v69_v61 }
  0x15   :  { %437 = vmatpush.msra.mxu2 %v116_v9  ;;  %438 = vmatpush.msra.mxu3 %v116_v9  ;;  %v89_v2 = vcvt.s32.f32 %v73_v62 }
  0x16   :  { %128 = vmatpush.msra.mxu0 %v115_v10  ;;  %439 = vmatpush.msra.mxu1 %v115_v10 }
  0x17   :  { %440 = vmatpush.msra.mxu2 %v115_v10  ;;  %441 = vmatpush.msra.mxu3 %v115_v10 }
  0x18   :  { %129 = vmatpush.msra.mxu0 %v114_v11  ;;  %442 = vmatpush.msra.mxu1 %v114_v11 }
  0x19   :  { %443 = vmatpush.msra.mxu2 %v114_v11  ;;  %444 = vmatpush.msra.mxu3 %v114_v11 }
  0x1a   :  { %271 = vperm.xlu1 %475, %v241_v12   ;;  %286 = vperm.xlu0 %474, %v244_v13  }
  0x1b   :  { %130 = vmatpush.msra.mxu0 %v113_v14  ;;  %445 = vmatpush.msra.mxu1 %v113_v14 }
  0x1c   :  { %446 = vmatpush.msra.mxu2 %v113_v14  ;;  %447 = vmatpush.msra.mxu3 %v113_v14  ;;  %v693_v14 = vld [vmem:[%s722_s3] ss:$0 sm:$0xff]  ;;  %s406_s3 = sshll.u32 %s534_s2, 4  ;;  %s407_s3 = int_to_ptr.vmem [resolvable:$true] %s406_s3 }
  0x1d   :  { %131 = vmatpush.msra.mxu0 %v112_v15  ;;  %448 = vmatpush.msra.mxu1 %v112_v15 }
  0x1e   :  { %449 = vmatpush.msra.mxu2 %v112_v15  ;;  %450 = vmatpush.msra.mxu3 %v112_v15 }
  0x1f   :  { %132 = vmatpush.msra.mxu0 %v111_v16  ;;  %451 = vmatpush.msra.mxu1 %v111_v16 }
  0x20   :  { %452 = vmatpush.msra.mxu2 %v111_v16  ;;  %453 = vmatpush.msra.mxu3 %v111_v16 }
  0x21   :  { %133 = vmatpush.msra.mxu0 %v110_v17  ;;  %454 = vmatpush.msra.mxu1 %v110_v17 }
  0x22   :  { %455 = vmatpush.msra.mxu2 %v110_v17  ;;  %456 = vmatpush.msra.mxu3 %v110_v17 }
  0x23   :  { %291 = vperm.xlu1 %475, %v245_v18   ;;  %301 = vperm.xlu0 %474, %v247_v19  }
  0x24   :  { %134 = vmatpush.msra.mxu0 %v109_v20  ;;  %457 = vmatpush.msra.mxu1 %v109_v20 }
  0x25   :  { %458 = vmatpush.msra.mxu2 %v109_v20  ;;  %459 = vmatpush.msra.mxu3 %v109_v20 }
  0x26   :  { %135 = vmatpush.msra.mxu0 %v108_v24  ;;  %460 = vmatpush.msra.mxu1 %v108_v24 }
  0x27   :  { %461 = vmatpush.msra.mxu2 %v108_v24  ;;  %462 = vmatpush.msra.mxu3 %v108_v24 }
  0x28   :  { %136 = vmatpush.msra.mxu0 %v107_v27  ;;  %463 = vmatpush.msra.mxu1 %v107_v27 }
  0x29   :  { %464 = vmatpush.msra.mxu2 %v107_v27  ;;  %465 = vmatpush.msra.mxu3 %v107_v27 }
  0x2a   :  { %137 = vmatpush.msra.mxu0 %v106_v31  ;;  %466 = vmatpush.msra.mxu1 %v106_v31 }
  0x2b   :  { %467 = vmatpush.msra.mxu2 %v106_v31  ;;  %468 = vmatpush.msra.mxu3 %v106_v31 }
  0x2c   :  { %138 = vmatmul.f32.vlgmr.msra.gmra.mxu0 %v74_v32  ;;  %150 = vmatmul.f32.vlgmr.msra.gmra.mxu1 %v78_v33 }
  0x2d   :  { %162 = vmatmul.f32.vlgmr.msra.gmra.mxu2 %v82_v34  ;;  %174 = vmatmul.f32.vlgmr.msra.gmra.mxu3 %v86_v35 }
  0x2e   :  { %276 = vperm.xlu2 %476, %v242_v36   ;;  %306 = vperm.xlu1 %475, %v248_v37  }
  0x2f   :  { %316 = vperm.xlu0 %474, %v250_v38  }
  0x34   :  { %141 = vmatmul.f32.gmra.mxu0 %v75_v43  ;;  %153 = vmatmul.f32.gmra.mxu1 %v79_v44 }
  0x35   :  { %165 = vmatmul.f32.gmra.mxu2 %v83_v45  ;;  %177 = vmatmul.f32.gmra.mxu3 %v87_v46 }
  0x36   :  { %281 = vperm.xlu2 %476, %v243_v47   ;;  %321 = vperm.xlu1 %475, %v251_v48  }
  0x37   :  { %331 = vperm.xlu0 %474, %v253_v49  }
  0x3c   :  { %144 = vmatmul.f32.gmra.mxu0 %v76_v54  ;;  %156 = vmatmul.f32.gmra.mxu1 %v80_v55 }
  0x3d   :  { %168 = vmatmul.f32.gmra.mxu2 %v84_v56  ;;  %180 = vmatmul.f32.gmra.mxu3 %v88_v57 }
  0x3e   :  { %296 = vperm.xlu2 %476, %v246_v58  }
  0x44   :  { %147 = vmatmul.f32.gmra.mxu0 %v77_v63  ;;  %159 = vmatmul.f32.gmra.mxu1 %v81_v0 }
  0x45   :  { %171 = vmatmul.f32.gmra.mxu2 %v85_v1  ;;  %183 = vmatmul.f32.gmra.mxu3 %v89_v2 }
  0x46   :  { %311 = vperm.xlu2 %476, %v249_v3  }
  0x4e   :  { %326 = vperm.xlu2 %476, %v252_v4  }
  0x7a   :  { %v257_v5 = vpop.permute.xlu0 %256 }
  0x83   :  { %v267_v6 = vpop.permute.xlu1 %266  ;;  %v262_v7 = vpop.permute.xlu0 %261 }
  0x88   :  { %v277_v8 = vpop.permute.xlu2 %276 }
  0x8c   :  { %v686_v9 = vpop.permute.xlu1 %271  ;;  %v287_v10 = vpop.permute.xlu0 %286 }
  0x90   :  { %v282_v11 = vpop.permute.xlu2 %281 }
  0x95   :  { %v688_v12 = vpop.permute.xlu1 %291  ;;  %v302_v13 = vpop.permute.xlu0 %301 }
  0x98   :  { %v297_v19 = vpop.permute.xlu2 %296 }
  0xa0   :  { %v307_v22 = vpop.permute.xlu1 %306  ;;  %v312_v40 = vpop.permute.xlu2 %311 }
  0xa1   :  { %v317_v26 = vpop.permute.xlu0 %316 }
  0xa8   :  { %v322_v44 = vpop.permute.xlu1 %321  ;;  %v327_v61 = vpop.permute.xlu2 %326 }
  0xa9   :  { %v139_v15 = vpop.f32.mrf.mxu0  ;;  %v151_v16 = vpop.f32.mrf.mxu1 }
  0xaa   :  { %v334_v17 = vmul.f32 %v257_v5, %v139_v15  ;;  %v338_v18 = vmul.f32 %v277_v8, %v151_v16 }
  0xac   :  { %v354_v20 = vadd.f32 %v693_v14, %v334_v17  ;;  %v358_v21 = vadd.f32 %v693_v14, %v338_v18  ;;  %v332_v17 = vpop.permute.xlu0 %331 }
  0xae   :  { %v370_v23 = vmax.f32 %v354_v20, 0.0  ;;  %v374_v24 = vmax.f32 %v358_v21, 0.0 }
  0xb0   :  { %v163_v25 = vpop.f32.mrf.mxu2  ;;  %386 = vst [vmem:[#allocation6] sm:$0xff] %v370_v23  ;;  %v175_v28 = vpop.f32.mrf.mxu3 }
  0xb1   :  { %v342_v27 = vmul.f32 %v297_v19, %v163_v25  ;;  %390 = vst [vmem:[#allocation6 + $0x20] sm:$0xff] %v374_v24  ;;  %v346_v29 = vmul.f32 %v317_v26, %v175_v28  ;;  %v142_v30 = vpop.f32.mrf.mxu0  ;;  %v154_v31 = vpop.f32.mrf.mxu1 }
  0xb2   :  { %v335_v33 = vmul.f32 %v262_v7, %v142_v30  ;;  %v339_v34 = vmul.f32 %v282_v11, %v154_v31 }
  0xb3   :  { %v362_v32 = vadd.f32 %v693_v14, %v342_v27  ;;  %v366_v35 = vadd.f32 %v693_v14, %v346_v29 }
  0xb4   :  { %v355_v37 = vadd.f32 %v693_v14, %v335_v33  ;;  %v359_v38 = vadd.f32 %v693_v14, %v339_v34 }
  0xb5   :  { %v378_v36 = vmax.f32 %v362_v32, 0.0  ;;  %v382_v39 = vmax.f32 %v366_v35, 0.0 }
  0xb6   :  { %v371_v41 = vmax.f32 %v355_v37, 0.0  ;;  %v375_v42 = vmax.f32 %v359_v38, 0.0 }
  0xb7   :  { %394 = vst [vmem:[#allocation6 + $0x40] sm:$0xff] %v378_v36 }
  0xb8   :  { %398 = vst [vmem:[#allocation6 + $0x60] sm:$0xff] %v382_v39  ;;  %v166_v43 = vpop.f32.mrf.mxu2  ;;  %v178_v46 = vpop.f32.mrf.mxu3 }
  0xb9   :  { %387 = vst [vmem:[#allocation6 + $0x8] sm:$0xff] %v371_v41  ;;  %v343_v45 = vmul.f32 %v302_v13, %v166_v43  ;;  %v347_v47 = vmul.f32 %v322_v44, %v178_v46  ;;  %v145_v48 = vpop.f32.mrf.mxu0  ;;  %v157_v49 = vpop.f32.mrf.mxu1 }
  0xba   :  { %391 = vst [vmem:[#allocation6 + $0x28] sm:$0xff] %v375_v42  ;;  %v336_v51 = vmul.f32 %v267_v6, %v145_v48  ;;  %v340_v52 = vmul.f32 %v287_v10, %v157_v49 }
  0xbb   :  { %v363_v50 = vadd.f32 %v693_v14, %v343_v45  ;;  %v367_v53 = vadd.f32 %v693_v14, %v347_v47 }
  0xbc   :  { %v356_v55 = vadd.f32 %v693_v14, %v336_v51  ;;  %v360_v56 = vadd.f32 %v693_v14, %v340_v52 }
  0xbd   :  { %v379_v54 = vmax.f32 %v363_v50, 0.0  ;;  %v383_v57 = vmax.f32 %v367_v53, 0.0 }
  0xbe   :  { %v372_v58 = vmax.f32 %v356_v55, 0.0  ;;  %v376_v59 = vmax.f32 %v360_v56, 0.0 }
  0xbf   :  { %395 = vst [vmem:[#allocation6 + $0x48] sm:$0xff] %v379_v54 }
  0xc0   :  { %399 = vst [vmem:[#allocation6 + $0x68] sm:$0xff] %v383_v57  ;;  %v169_v60 = vpop.f32.mrf.mxu2  ;;  %v181_v63 = vpop.f32.mrf.mxu3 }
  0xc1   :  { %388 = vst [vmem:[#allocation6 + $0x10] sm:$0xff] %v372_v58  ;;  %v344_v62 = vmul.f32 %v307_v22, %v169_v60  ;;  %v348_v0 = vmul.f32 %v327_v61, %v181_v63  ;;  %v148_v1 = vpop.f32.mrf.mxu0  ;;  %v160_v2 = vpop.f32.mrf.mxu1 }
  0xc2   :  { %392 = vst [vmem:[#allocation6 + $0x30] sm:$0xff] %v376_v59  ;;  %v337_v4 = vmul.f32 %v686_v9, %v148_v1  ;;  %v341_v5 = vmul.f32 %v688_v12, %v160_v2 }
  0xc3   :  { %v364_v3 = vadd.f32 %v693_v14, %v344_v62  ;;  %v368_v6 = vadd.f32 %v693_v14, %v348_v0 }
  0xc4   :  { %v357_v8 = vadd.f32 %v693_v14, %v337_v4  ;;  %v361_v10 = vadd.f32 %v693_v14, %v341_v5 }
  0xc5   :  { %v380_v7 = vmax.f32 %v364_v3, 0.0  ;;  %v384_v11 = vmax.f32 %v368_v6, 0.0 }
  0xc6   :  { %v373_v13 = vmax.f32 %v357_v8, 0.0  ;;  %v377_v15 = vmax.f32 %v361_v10, 0.0 }
  0xc7   :  { %396 = vst [vmem:[#allocation6 + $0x50] sm:$0xff] %v380_v7 }
  0xc8   :  { %400 = vst [vmem:[#allocation6 + $0x70] sm:$0xff] %v384_v11  ;;  %v172_v16 = vpop.f32.mrf.mxu2  ;;  %v184_v19 = vpop.f32.mrf.mxu3 }
  0xc9   :  { %389 = vst [vmem:[#allocation6 + $0x18] sm:$0xff] %v373_v13  ;;  %v345_v18 = vmul.f32 %v312_v40, %v172_v16  ;;  %v349_v9 = vmul.f32 %v332_v17, %v184_v19 }
  0xca   :  { %393 = vst [vmem:[#allocation6 + $0x38] sm:$0xff] %v377_v15 }
  0xcb   :  { %v365_v12 = vadd.f32 %v693_v14, %v345_v18  ;;  %v369_v20 = vadd.f32 %v693_v14, %v349_v9 }
  0xcd   :  { %v381_v21 = vmax.f32 %v365_v12, 0.0  ;;  %v385_v22 = vmax.f32 %v369_v20, 0.0 }
  0xcf   :  { %397 = vst [vmem:[#allocation6 + $0x58] sm:$0xff] %v381_v21 }
  0xd0   :  { %401 = vst [vmem:[#allocation6 + $0x78] sm:$0xff] %v385_v22 }
  0xd1   :  { %414 = dma.vmem_to_hbm [thread:$0]  %s407_s3, 2048, %s409_s12, [#allocation5], %s531_s20, %s531_s20, %s532_s21  }
  0xd2   :  { %528 = dma.done.wait [#allocation5], 2048  }
  0xd3   :  { %529 = vsyncadd [#allocation5], 4294965248 }
  0xd4   :  { %419 = vsyncpa [#allocation4], 1 }
  0xd5   :  { %420 = vsyncpa [#allocation5], 1 }

</bundles_post_ra>
